<compile_context>
chip_gen: v7x
topology: tpu7x:2x2x1
jax: 0.10.0
libtpu: 0.0.40
codegen_flags: <defaults>
</compile_context>

<pallas_src>
import math
from typing import NamedTuple, List, Tuple

import jax
import jax.numpy as jnp
from jax.experimental import pallas as pl
from jax.experimental.pallas import tpu as pltpu


# ----------------------------------------------------------------------------
# Minimal irreps / instruction machinery (stand-in for lie.Rep)
# ----------------------------------------------------------------------------
class MulIr(NamedTuple):
    mul: int   # multiplicity
    rep: int   # rep id (equal ids may be connected by a path)
    dim: int   # dimension of the rep

    def is_scalar(self):
        return self.rep == 0 and self.dim == 1


class Instruction(NamedTuple):
    i_in: int
    i_out: int
    path_shape: Tuple[int, ...]
    path_weight: float


def make_instructions(irreps_in: List[MulIr], irreps_out: List[MulIr],
                      biases, path_normalization: str = "element"):
    pairs = [(i_in, i_out)
             for i_in, ir_in in enumerate(irreps_in)
             for i_out, ir_out in enumerate(irreps_out)
             if ir_in.rep == ir_out.rep]
    instructions = [Instruction(i_in, i_out,
                                (irreps_in[i_in].mul, irreps_out[i_out].mul), 1.0)
                    for (i_in, i_out) in pairs]

    def alpha(ins):
        x = sum(irreps_in[i.i_in if path_normalization == "element" else ins.i_in].mul
                for i in instructions if i.i_out == ins.i_out)
        return 1.0 if x == 0 else x

    instructions = [Instruction(ins.i_in, ins.i_out, ins.path_shape, alpha(ins) ** (-0.5))
                    for ins in instructions]

    if isinstance(biases, bool):
        biases = [biases and ir.is_scalar() for ir in irreps_out]
    instructions += [Instruction(-1, i_out, (mul_ir.mul * mul_ir.dim,), 1.0)
                     for i_out, (b, mul_ir) in enumerate(zip(biases, irreps_out)) if b]

    weight_numel = sum(math.prod(ins.path_shape) for ins in instructions if ins.i_in != -1)
    bias_numel = sum(irreps_out[ins.i_out].mul * irreps_out[ins.i_out].dim
                     for ins in instructions if ins.i_in == -1)
    return instructions, weight_numel, bias_numel


def _offsets(irreps):
    offs, d = [], 0
    for ir in irreps:
        offs.append(d)
        d += ir.mul * ir.dim
    return offs, d


# ----------------------------------------------------------------------------
# Parameter glue: fold the per-path block structure into one dense matrix.
# Exact: each path contributes path_weight * kron(W_path, I_dim).
# ----------------------------------------------------------------------------
def build_dense_params(weight_flat, bias_flat, irreps_in, irreps_out, instructions):
    in_off, in_dim = _offsets(irreps_in)
    out_off, out_dim = _offsets(irreps_out)
    dtype = weight_flat.dtype if weight_flat.size else jnp.float32

    W = jnp.zeros((in_dim, out_dim), dtype)
    b = jnp.zeros((out_dim,), dtype)
    fw = fb = 0
    for ins in instructions:
        n = math.prod(ins.path_shape)
        if ins.i_in == -1:
            seg = bias_flat[fb:fb + n] * ins.path_weight
            fb += n
            c0 = out_off[ins.i_out]
            b = b.at[c0:c0 + n].add(seg)
        else:
            mul_ir_in = irreps_in[ins.i_in]
            w = weight_flat[fw:fw + n].reshape(ins.path_shape) * ins.path_weight
            fw += n
            blk = jnp.kron(w, jnp.eye(mul_ir_in.dim, dtype=dtype))
            r0, c0 = in_off[ins.i_in], out_off[ins.i_out]
            W = W.at[r0:r0 + blk.shape[0], c0:c0 + blk.shape[1]].add(blk)
    return W, b


# ----------------------------------------------------------------------------
# Pallas kernel: tiled (packed-batch) matmul + bias  — the hot path.
# ----------------------------------------------------------------------------
def _linear_kernel(x_ref, w_ref, b_ref, o_ref):
    acc = jnp.dot(x_ref[...], w_ref[...], preferred_element_type=jnp.float32)
    acc = acc + b_ref[...]                 # bias kept in f32; broadcast (1, d_out_p)
    o_ref[...] = acc.astype(o_ref.dtype)


def _round_up(x, m):
    return ((x + m - 1) // m) * m


def linear_pallas_2d(x2d, w_full, bias_full, *, tb_rows=32768, pack_target=None):
    """out2d = x2d @ w_full + bias_full, lane-packed & tiled over batch only."""
    B, d_in = x2d.shape
    d_out = w_full.shape[1]
    dtype = x2d.dtype
    itemsize = x2d.dtype.itemsize

    # ---- lane-packing factor r: largest power-of-two divisor of B <= target.
    # (Pure reshape -> no pad / extra HBM pass; odd B falls back to smaller r.)
    if pack_target is None:
        pack_target = 8 if itemsize >= 4 else 16     # f32: 8, bf16: 16
    r = math.gcd(B, pack_target) if B > 0 else 1
    r = max(r, 1)
    Bp = B // r
    d_in_p, d_out_p = r * d_in, r * d_out

    x2p = x2d.reshape(Bp, d_in_p)                    # metadata-only reshape
    # Block-diagonal of r copies of the dense (d_in, d_out) block.
    w_p = jnp.kron(jnp.eye(r, dtype=w_full.dtype), w_full).astype(dtype)
    b_p = jnp.tile(bias_full.astype(jnp.float32), r).reshape(1, d_out_p)

    # ---- batch tiling (in packed rows).
    sub = 8 if itemsize >= 4 else (16 if itemsize == 2 else 32)
    tb_p_max = max(sub, tb_rows // r)
    if Bp > sub:
        # At least 2 grid steps so both v7x TensorCores get work and the
        # pipeline prologue/epilogue are hidden.
        n_steps = max(2, pl.cdiv(Bp, tb_p_max))
        tb_p = _round_up(pl.cdiv(Bp, n_steps), sub)
    else:
        tb_p = max(Bp, 1)                            # tiny problem: single step
    grid = (pl.cdiv(Bp, tb_p),)

    cost = pl.CostEstimate(
        flops=2 * Bp * d_in_p * d_out_p,
        transcendentals=0,
        bytes_accessed=(Bp * d_in_p * itemsize        # x read
                        + Bp * d_out_p * itemsize     # out write
                        + d_in_p * d_out_p * itemsize # W (resident)
                        + d_out_p * 4))               # bias (f32)

    out_p = pl.pallas_call(
        _linear_kernel,
        out_shape=jax.ShapeDtypeStruct((Bp, d_out_p), dtype),
        grid=grid,
        in_specs=[
            # x: streamed packed-batch tiles.  Ragged last block handled by
            # Pallas (OOB output rows masked on writeback; valid because every
            # packed row depends only on its own packed row -> block-diag W).
            pl.BlockSpec((tb_p, d_in_p), lambda i: (i, 0)),
            # W / bias: constant index map -> resident across the grid.
            pl.BlockSpec((d_in_p, d_out_p), lambda i: (0, 0)),
            pl.BlockSpec((1, d_out_p), lambda i: (0, 0)),
        ],
        out_specs=pl.BlockSpec((tb_p, d_out_p), lambda i: (i, 0)),
        compiler_params=pltpu.CompilerParams(
            # Pure batch parallelism: shards across both TensorCores on v7x.
            dimension_semantics=("parallel",),
            # ~21 MiB worst-case footprint at default tiles; 16 MiB default on
            # v5e is too small, 32 MiB is safe on every generation (v7x has
            # 64 MiB physical, so headroom remains).
            vmem_limit_bytes=32 * 1024 * 1024),
        cost_estimate=cost,
        # If xprof shows exposed input DMA on v7x, add
        # pipeline_mode=pl.Buffered(3) to the x BlockSpec (packed blocks are
        # small enough that a third buffer is cheap).
    )(x2p, w_p, b_p)

    return out_p.reshape(B, d_out)


def linear_forward(features, weight_flat, bias_flat, irreps_in, irreps_out,
                   instructions, *, tb_rows=32768):
    _, in_dim = _offsets(irreps_in)
    _, out_dim = _offsets(irreps_out)
    size = features.shape[:-1]
    x2d = features.reshape(-1, in_dim)
    W, b = build_dense_params(weight_flat, bias_flat, irreps_in, irreps_out, instructions)
    out2d = linear_pallas_2d(x2d, W, b, tb_rows=tb_rows)
    return out2d.reshape(size + (out_dim,))


# ----------------------------------------------------------------------------
# Pure-JAX reference mirroring the torch fx codegen (per-instruction einsums)
# ----------------------------------------------------------------------------
def linear_reference(features, weight_flat, bias_flat, irreps_in, irreps_out, instructions):
    _, in_dim = _offsets(irreps_in)
    _, out_dim = _offsets(irreps_out)
    size = features.shape[:-1]
    x = features.reshape(-1, in_dim)
    B = x.shape[0]

    x_list, d = [], 0
    for mul_ir in irreps_in:
        x_list.append(x[:, d:d + mul_ir.mul * mul_ir.dim].reshape(B, mul_ir.mul, mul_ir.dim))
        d += mul_ir.mul * mul_ir.dim

    fw = fb = 0
    out_list = []
    for ins in instructions:
        mul_ir_out = irreps_out[ins.i_out]
        n = math.prod(ins.path_shape)
        if ins.i_in == -1:
            bseg = bias_flat[fb:fb + n]
            fb += n
            out_list.append((ins.path_weight * bseg).reshape(1, mul_ir_out.mul * mul_ir_out.dim))
        else:
            w = weight_flat[fw:fw + n].reshape(ins.path_shape)
            fw += n
            ein = jnp.einsum('uw,zui->zwi', w, x_list[ins.i_in]) * ins.path_weight
            out_list.append(ein.reshape(B, mul_ir_out.mul * mul_ir_out.dim))

    outs = []
    for i_out, mul_ir_out in enumerate(irreps_out):
        if mul_ir_out.mul == 0:
            continue
        terms = [o for ins, o in zip(instructions, out_list) if ins.i_out == i_out]
        if terms:
            acc = terms[0]
            for t in terms[1:]:
                acc = acc + t
            acc = jnp.broadcast_to(acc, (B, mul_ir_out.mul * mul_ir_out.dim))
        else:
            acc = jnp.zeros((B, mul_ir_out.mul * mul_ir_out.dim), x.dtype)
        outs.append(acc)
    out = jnp.concatenate(outs, axis=-1) if len(outs) > 1 else outs[0]
    return out.reshape(size + (out_dim,))


# ----------------------------------------------------------------------------
if __name__ == "__main__":
    # irreps_in:  4x scalar (dim 1) + 8x vector-like rep (dim 3)  -> dim 28
    # irreps_out: 8x scalar (dim 1) + 4x vector-like rep (dim 3)  -> dim 20
    irreps_in = [MulIr(4, 0, 1), MulIr(8, 1, 3)]
    irreps_out = [MulIr(8, 0, 1), MulIr(4, 1, 3)]
    instructions, weight_numel, bias_numel = make_instructions(
        irreps_in, irreps_out, biases=True, path_normalization="element")
    assert weight_numel == 4 * 8 + 8 * 4 and bias_numel == 8

    key = jax.random.PRNGKey(0)
    kx, kw, kb = jax.random.split(key, 3)
    _, in_dim = _offsets(irreps_in)

    weight_flat = jax.random.normal(kw, (weight_numel,), dtype=jnp.float32)  # torch: randn
    bias_flat = 0.1 * jax.random.normal(kb, (bias_numel,), dtype=jnp.float32)

    # 1) Small batch, multiple of 8  -> lane-packed path (r=8), single step.
    features = jax.random.normal(kx, (2, 8, in_dim), dtype=jnp.float32)
    out = jax.block_until_ready(
        linear_forward(features, weight_flat, bias_flat, irreps_in, irreps_out, instructions))
    ref = linear_reference(features, weight_flat, bias_flat, irreps_in, irreps_out, instructions)
    assert out.shape == (2, 8, 20), out.shape
    assert jnp.allclose(out, ref, atol=1e-5, rtol=1e-5), float(jnp.max(jnp.abs(out - ref)))

    # 2) Batch NOT a multiple of 8 -> unpacked fallback (r=1), 2-step ragged grid.
    features2 = jax.random.normal(kx, (3, 7, in_dim), dtype=jnp.float32)
    out2 = jax.block_until_ready(
        linear_forward(features2, weight_flat, bias_flat, irreps_in, irreps_out, instructions))
    ref2 = linear_reference(features2, weight_flat, bias_flat, irreps_in, irreps_out, instructions)
    assert out2.shape == (3, 7, 20), out2.shape
    assert jnp.allclose(out2, ref2, atol=1e-5, rtol=1e-5), float(jnp.max(jnp.abs(out2 - ref2)))

    # 3) Larger batch -> packed (r=8), multi-step grid with ragged last packed block.
    features3 = jax.random.normal(kx, (4, 520, in_dim), dtype=jnp.float32)   # B = 2080
    out3 = jax.block_until_ready(
        linear_forward(features3, weight_flat, bias_flat, irreps_in, irreps_out, instructions))
    ref3 = linear_reference(features3, weight_flat, bias_flat, irreps_in, irreps_out, instructions)
    assert out3.shape == (4, 520, 20), out3.shape
    assert jnp.allclose(out3, ref3, atol=1e-5, rtol=1e-5), float(jnp.max(jnp.abs(out3 - ref3)))

    # 4) bf16 activation/output path (f32 accumulation + f32 bias add in-kernel).
    features4 = features.astype(jnp.bfloat16)
    out4 = jax.block_until_ready(
        linear_forward(features4, weight_flat, bias_flat, irreps_in, irreps_out, instructions))
    assert out4.dtype == jnp.bfloat16 and out4.shape == (2, 8, 20)
    assert jnp.allclose(out4.astype(jnp.float32), ref, atol=5e-1, rtol=5e-2), \
        float(jnp.max(jnp.abs(out4.astype(jnp.float32) - ref)))

    print("KERNEL_OK")
</pallas_src>

<mosaic_0001>
module attributes {stable_mosaic.version = 11 : i64} {
  func.func @_linear_kernel(%arg0: i32, %arg1: memref<2x224xf32, #tpu.memory_space<vmem>>, %arg2: memref<224x160xf32, #tpu.memory_space<vmem>>, %arg3: memref<1x160xf32, #tpu.memory_space<vmem>>, %arg4: memref<2x160xf32, #tpu.memory_space<vmem>>) attributes {dimension_semantics = [#tpu.dimension_semantics<parallel>], iteration_bounds = array<i64: 1>, scalar_prefetch = 0 : i64, scratch_operands = 0 : i64, tpu.core_type = #tpu.core_type<tc>, window_params = [{transform_indices = @transform_0, window_bounds = array<i64: 2, 224>}, {pipeline_mode = #tpu.pipeline_mode<synchronous>, transform_indices = @transform_1, window_bounds = array<i64: 224, 160>}, {pipeline_mode = #tpu.pipeline_mode<synchronous>, transform_indices = @transform_2, window_bounds = array<i64: 1, 160>}, {transform_indices = @transform_3, window_bounds = array<i64: 2, 160>}]} {
    %c0 = arith.constant 0 : index
    %c0_0 = arith.constant 0 : index
    %0 = vector.load %arg1[%c0, %c0_0] : memref<2x224xf32, #tpu.memory_space<vmem>>, vector<2x224xf32>
    %c0_1 = arith.constant 0 : index
    %c0_2 = arith.constant 0 : index
    %1 = vector.load %arg2[%c0_1, %c0_2] : memref<224x160xf32, #tpu.memory_space<vmem>>, vector<224x160xf32>
    %cst = arith.constant dense<0.000000e+00> : vector<2x160xf32>
    %2 = tpu.matmul %0, %1, %cst {dimension_numbers = #tpu.dot_dimension_numbers<[1], [0], [0], [1], [0, 0, 1, 1], [], []>} : vector<2x224xf32>, vector<224x160xf32>, vector<2x160xf32> -> vector<2x160xf32>
    %c0_3 = arith.constant 0 : index
    %c0_4 = arith.constant 0 : index
    %3 = vector.load %arg3[%c0_3, %c0_4] : memref<1x160xf32, #tpu.memory_space<vmem>>, vector<1x160xf32>
    %4 = vector.broadcast %3 : vector<1x160xf32> to vector<2x160xf32>
    %5 = arith.addf %2, %4 : vector<2x160xf32>
    %c0_5 = arith.constant 0 : index
    %c0_6 = arith.constant 0 : index
    %6 = vector.load %arg4[%c0_5, %c0_6] : memref<2x160xf32, #tpu.memory_space<vmem>>, vector<2x160xf32>
    tpu.vector_store %arg4[%c0_5, %c0_6], %5 {strides = array<i32>} : memref<2x160xf32, #tpu.memory_space<vmem>>, vector<2x160xf32>,
    return
  }
  func.func @transform_0(%arg0: i32) -> (i32, i32) {
    %c0_i32 = arith.constant 0 : i32
    %c0_i32_0 = arith.constant 0 : i32
    return %arg0, %c0_i32 : i32, i32
  }
  func.func @transform_1(%arg0: i32) -> (i32, i32) {
    %c0_i32 = arith.constant 0 : i32
    %c0_i32_0 = arith.constant 0 : i32
    %c0_i32_1 = arith.constant 0 : i32
    return %c0_i32, %c0_i32_0 : i32, i32
  }
  func.func @transform_2(%arg0: i32) -> (i32, i32) {
    %c0_i32 = arith.constant 0 : i32
    %c0_i32_0 = arith.constant 0 : i32
    %c0_i32_1 = arith.constant 0 : i32
    return %c0_i32, %c0_i32_0 : i32, i32
  }
  func.func @transform_3(%arg0: i32) -> (i32, i32) {
    %c0_i32 = arith.constant 0 : i32
    %c0_i32_0 = arith.constant 0 : i32
    return %arg0, %c0_i32 : i32, i32
  }
}

</mosaic_0001>

<bundles_post_ra>
// kernel: tpu_custom_call.1
= control target key start
LH: loop header
LB: loop body
LE: loop exit
PB: predicated region body
PF: predicated region fallthrough
CT: control target
= control target key end

     0   :  { %vm94_vm0 = vcmask 785408   ;;  %s494_s0 = inlined_call_operand.vmem [shape: f32[2,224], index: 0, kind: input, shape index: {}]   ;;  %s495_s1 = inlined_call_operand.vmem [shape: f32[224,160], index: 1, kind: input, shape index: {}]   ;;  %s496_s2 = inlined_call_operand.vmem [shape: f32[1,160], index: 2, kind: input, shape index: {}]   ;;  %s497_s3 = inlined_call_operand.hbm [shape: f32[2,160], index: 3, kind: output, shape index: {}]  }
   0x1   :  { %v17_v0 = vld [vmem:[%s495_s1 + $0x8] sm:$0xff]  ;;  %v19_v1 = vld [vmem:[%s495_s1 + $0x18] sm:$0xff]  ;;  %v16_v2 = vld [vmem:[%s495_s1] sm:$0xff] }
   0x2   :  { %v199_v3 = vpack.c.bf16 %v19_v1, %v17_v0  ;;  %v18_v4 = vld [vmem:[%s495_s1 + $0x10] sm:$0xff]  ;;  %v21_v5 = vld [vmem:[%s495_s1 + $0x28] sm:$0xff]  ;;  %v23_v6 = vld [vmem:[%s495_s1 + $0x38] sm:$0xff] }
   0x3   :  { %v201_v7 = vpack.c.bf16 %v18_v4, %v16_v2  ;;  %v203_v8 = vpack.c.bf16 %v23_v6, %v21_v5  ;;  %v20_v9 = vld [vmem:[%s495_s1 + $0x20] sm:$0xff]  ;;  %v22_v10 = vld [vmem:[%s495_s1 + $0x30] sm:$0xff]  ;;  %v25_v11 = vld [vmem:[%s495_s1 + $0x48] sm:$0xff] }
   0x4   :  { %200 = vmatprep.subr.bf16.mxu0 %v199_v3  ;;  %v27_v12 = vld [vmem:[%s495_s1 + $0x58] sm:$0xff]  ;;  %v205_v13 = vpack.c.bf16 %v22_v10, %v20_v9  ;;  %v24_v15 = vld [vmem:[%s495_s1 + $0x40] sm:$0xff]  ;;  %v26_v16 = vld [vmem:[%s495_s1 + $0x50] sm:$0xff] }
   0x5   :  { %202 = vmatpush1.bf16.msra.mxu0 %v201_v7  ;;  %v207_v14 = vpack.c.bf16 %v27_v12, %v25_v11  ;;  %v29_v17 = vld [vmem:[%s495_s1 + $0x68] sm:$0xff]  ;;  %v31_v18 = vld [vmem:[%s495_s1 + $0x78] sm:$0xff]  ;;  %v209_v19 = vpack.c.bf16 %v26_v16, %v24_v15  ;;  %v28_v21 = vld [vmem:[%s495_s1 + $0x60] sm:$0xff] }
   0x6   :  { %204 = vmatprep.subr.bf16.mxu0 %v203_v8  ;;  %v211_v20 = vpack.c.bf16 %v31_v18, %v29_v17  ;;  %v30_v22 = vld [vmem:[%s495_s1 + $0x70] sm:$0xff]  ;;  %v33_v23 = vld [vmem:[%s495_s1 + $0x88] sm:$0xff]  ;;  %v35_v24 = vld [vmem:[%s495_s1 + $0x98] sm:$0xff] }
   0x7   :  { %v213_v25 = vpack.c.bf16 %v30_v22, %v28_v21  ;;  %v215_v26 = vpack.c.bf16 %v35_v24, %v33_v23  ;;  %v32_v27 = vld [vmem:[%s495_s1 + $0x80] sm:$0xff]  ;;  %v34_v28 = vld [vmem:[%s495_s1 + $0x90] sm:$0xff]  ;;  %v37_v29 = vld [vmem:[%s495_s1 + $0xa8] sm:$0xff] }
   0x8   :  { %v39_v30 = vld [vmem:[%s495_s1 + $0xb8] sm:$0xff]  ;;  %v217_v31 = vpack.c.bf16 %v34_v28, %v32_v27  ;;  %v36_v33 = vld [vmem:[%s495_s1 + $0xa0] sm:$0xff]  ;;  %v38_v34 = vld [vmem:[%s495_s1 + $0xb0] sm:$0xff] }
   0x9   :  { %206 = vmatpush1.bf16.msra.mxu0 %v205_v13  ;;  %v219_v32 = vpack.c.bf16 %v39_v30, %v37_v29  ;;  %v41_v35 = vld [vmem:[%s495_s1 + $0xc8] sm:$0xff]  ;;  %v43_v36 = vld [vmem:[%s495_s1 + $0xd8] sm:$0xff]  ;;  %v384_v37 = vld.sshfl [vmem:[%s494_s0] sm:$0x33 pattern:$0x76325410] }
   0xa   :  { %208 = vmatprep.subr.bf16.mxu0 %v207_v14  ;;  %v92_v38 = vcombine.high %v384_v37, %v384_v37 }
   0xd   :  { %210 = vmatpush1.bf16.msra.mxu0 %v209_v19 }
   0xe   :  { %212 = vmatprep.subr.bf16.mxu0 %v211_v20 }
  0x11   :  { %214 = vmatpush1.bf16.msra.mxu0 %v213_v25 }
  0x12   :  { %216 = vmatprep.subr.bf16.mxu0 %v215_v26 }
  0x13   :  { %8 = vsyncpa [#allocation3], 0  ;;  %v221_v39 = vpack.c.bf16 %v38_v34, %v36_v33  ;;  %v223_v40 = vpack.c.bf16 %v43_v36, %v41_v35  ;;  %v40_v41 = vld [vmem:[%s495_s1 + $0xc0] sm:$0xff]  ;;  %v42_v42 = vld [vmem:[%s495_s1 + $0xd0] sm:$0xff]  ;;  %198 = vmatprep.mubr.msk.f32.mxu0 %vm94_vm0, %v92_v38  ;;  %v74_v22 = vlaneseq  ;;  %v281_v27 = vmov 1983009808  }
  0x14   :  { %v45_v43 = vld [vmem:[%s495_s1 + $0xe8] sm:$0xff]  ;;  %v47_v44 = vld [vmem:[%s495_s1 + $0xf8] sm:$0xff]  ;;  %v225_v45 = vpack.c.bf16 %v42_v42, %v40_v41  ;;  %v44_v47 = vld [vmem:[%s495_s1 + $0xe0] sm:$0xff]  ;;  %v172_v28 = vunpack.c.l.s4 %v281_v27  ;;  %vm179_vm1 = vcmask 1041408   ;;  %vm180_vm2 = vcmask 257026  }
  0x15   :  { %218 = vmatpush1.bf16.msra.mxu0 %v217_v31  ;;  %v227_v46 = vpack.c.bf16 %v47_v44, %v45_v43  ;;  %v46_v48 = vld [vmem:[%s495_s1 + $0xf0] sm:$0xff]  ;;  %v49_v49 = vld [vmem:[%s495_s1 + $0x108] sm:$0xff]  ;;  %v51_v50 = vld [vmem:[%s495_s1 + $0x118] sm:$0xff]  ;;  %v75_v23 = vshrl.u32 %v74_v22, 7 }
  0x16   :  { %220 = vmatprep.subr.bf16.mxu0 %v219_v32  ;;  %v229_v51 = vpack.c.bf16 %v46_v48, %v44_v47  ;;  %v231_v52 = vpack.c.bf16 %v51_v50, %v49_v49  ;;  %v48_v53 = vld [vmem:[%s495_s1 + $0x100] sm:$0xff]  ;;  %v50_v54 = vld [vmem:[%s495_s1 + $0x110] sm:$0xff]  ;;  %v53_v55 = vld [vmem:[%s495_s1 + $0x128] sm:$0xff]  ;;  %v173_v31 = vunpack.c.0.s8 %v172_v28 }
  0x17   :  { %v55_v56 = vld [vmem:[%s495_s1 + $0x138] sm:$0xff]  ;;  %v233_v57 = vpack.c.bf16 %v50_v54, %v48_v53  ;;  %v52_v59 = vld [vmem:[%s495_s1 + $0x120] sm:$0xff]  ;;  %v54_v60 = vld [vmem:[%s495_s1 + $0x130] sm:$0xff]  ;;  %v76_v24 = vsub.s32 0, %v75_v23  ;;  %v80_v26 = vsub.s32 1, %v75_v23 }
  0x18   :  { %v235_v58 = vpack.c.bf16 %v55_v56, %v53_v55  ;;  %v57_v61 = vld [vmem:[%s495_s1 + $0x148] sm:$0xff]  ;;  %v59_v62 = vld [vmem:[%s495_s1 + $0x158] sm:$0xff]  ;;  %v237_v63 = vpack.c.bf16 %v54_v60, %v52_v59  ;;  %v56_v1 = vld [vmem:[%s495_s1 + $0x140] sm:$0xff]  ;;  %v176_v36 = vsub.s32 %v173_v31, %v75_v23 }
  0x19   :  { %222 = vmatpush1.bf16.msra.mxu0 %v221_v39  ;;  %v239_v0 = vpack.c.bf16 %v59_v62, %v57_v61  ;;  %v58_v2 = vld [vmem:[%s495_s1 + $0x150] sm:$0xff]  ;;  %v61_v3 = vld [vmem:[%s495_s1 + $0x168] sm:$0xff]  ;;  %v63_v4 = vld [vmem:[%s495_s1 + $0x178] sm:$0xff] }
  0x1a   :  { %224 = vmatprep.subr.bf16.mxu0 %v223_v40  ;;  %v241_v5 = vpack.c.bf16 %v58_v2, %v56_v1  ;;  %v243_v6 = vpack.c.bf16 %v63_v4, %v61_v3  ;;  %v60_v7 = vld [vmem:[%s495_s1 + $0x160] sm:$0xff]  ;;  %v62_v8 = vld [vmem:[%s495_s1 + $0x170] sm:$0xff]  ;;  %v65_v9 = vld [vmem:[%s495_s1 + $0x188] sm:$0xff] }
  0x1b   :  { %v67_v10 = vld [vmem:[%s495_s1 + $0x198] sm:$0xff]  ;;  %v245_v11 = vpack.c.bf16 %v62_v8, %v60_v7  ;;  %v64_v13 = vld [vmem:[%s495_s1 + $0x180] sm:$0xff]  ;;  %v66_v14 = vld [vmem:[%s495_s1 + $0x190] sm:$0xff] }
  0x1c   :  { %v247_v12 = vpack.c.bf16 %v67_v10, %v65_v9  ;;  %v69_v15 = vld [vmem:[%s495_s1 + $0x1a8] sm:$0xff]  ;;  %v71_v16 = vld [vmem:[%s495_s1 + $0x1b8] sm:$0xff]  ;;  %v249_v17 = vpack.c.bf16 %v66_v14, %v64_v13  ;;  %v68_v19 = vld [vmem:[%s495_s1 + $0x1a0] sm:$0xff] }
  0x1d   :  { %226 = vmatpush1.bf16.msra.mxu0 %v225_v45  ;;  %v251_v18 = vpack.c.bf16 %v71_v16, %v69_v15  ;;  %v70_v20 = vld [vmem:[%s495_s1 + $0x1b0] sm:$0xff]  ;;  %v72_v25 = vld [vmem:[%s496_s2] sm:$0x3]  ;;  %s282_s1 = smov [#allocation2]   ;;  %vm181_vm3 = vmor %vm180_vm2, %vm179_vm1 }
  0x1e   :  { %228 = vmatprep.subr.bf16.mxu0 %v227_v46  ;;  %v253_v21 = vpack.c.bf16 %v70_v20, %v68_v19  ;;  %v77_v29 = vrot.slane %v72_v25, %v76_v24  ;;  %v81_v30 = vrot.slane %v72_v25, %v80_v26  ;;  %s189_s17 = sshll.u32 %s282_s1, 4  ;;  %s190_s17 = int_to_ptr.vmem [resolvable:$true] %s189_s17 }
  0x1f   :  { %s257_s2 = scalar_lea.vmem %s190_s17, 64  ;;  %p262_p1 = scmp.lt.s32.totalorder %s190_s17, %s190_s17 }
  0x20   :  { %p258_p0 = scmp.ne.s32.totalorder %s190_s17, %s257_s2  ;;  %p263_p2 = scmp.lt.s32.totalorder %s257_s2, %s257_s2 }
  0x21   :  { %230 = vmatpush1.bf16.msra.mxu0 %v229_v51 }
  0x22   :  { %232 = vmatprep.subr.bf16.mxu0 %v231_v52  ;;  %p264_p3 = por %p263_p2, %p262_p1 }
  0x24   :  { %p265_p4 = pnand %p264_p3, %p258_p0 }
  0x25   :  { %234 = vmatpush1.bf16.msra.mxu0 %v233_v57 }
  0x26   :  { %236 = vmatprep.subr.bf16.mxu0 %v235_v58 }
  0x29   :  { %238 = vmatpush1.bf16.msra.mxu0 %v237_v63 }
  0x2a   :  { %240 = vmatprep.subr.bf16.mxu0 %v239_v0 }
  0x2d   :  { %242 = vmatpush1.bf16.msra.mxu0 %v241_v5 }
  0x2e   :  { %244 = vmatprep.subr.bf16.mxu0 %v243_v6 }
  0x31   :  { %246 = vmatpush1.bf16.msra.mxu0 %v245_v11 }
  0x32   :  { %248 = vmatprep.subr.bf16.mxu0 %v247_v12 }
  0x35   :  { %250 = vmatpush1.bf16.msra.mxu0 %v249_v17 }
  0x36   :  { %252 = vmatprep.subr.bf16.mxu0 %v251_v18 }
  0x39   :  { %254 = vmatpush1.bf16.msra.mxu0 %v253_v21 }
  0x3c   :  { %162 = vmatmul.mubr.f32.vlgmr.msra.gmra.mrb[0].mxu0 %v384_v37 }
 0x10f   :  { %v163_v32 = vpop.f32.mrb[0].mxu0 }
 0x110   :  { %v164_v33 = vadd.f32 %v163_v32, %v77_v29  ;;  %v165_v34 = vpop.f32.mrb[1].mxu0 }
 0x111   :  { %v166_v35 = vadd.f32 %v165_v34, %v81_v30 }
 0x113   :  { %v170_v37 = vcombine.low %v164_v33, %v166_v35 }
 0x115   :  { %v177_v38 = vrot.slane %v170_v37, %v176_v36 }
 0x117   :  { %182 = vst.msk [vmem:[#allocation2] sm:$0xf] %vm181_vm3, %v177_v38 }
 0x118   :  { %268 = shalt.err (!%p265_p4)
}
 0x119   :  { %s269_s20 = scalar_lea.hbm %s497_s3, 64 }
 0x11a   :  { %p270_p5 = scmp.ne.s32.totalorder %s497_s3, %s269_s20  ;;  %p273_p6 = scmp.lt.u32.totalorder %s269_s20, %s497_s3 }
 0x11c   :  { %p275_p7 = pnand %p273_p6, %p270_p5 }
 0x11e   :  { %278 = shalt.err (!%p275_p7)
}
 0x11f   :  { %192 = dma.vmem_to_hbm [thread:$0]  %s190_s17, 64, %s497_s3, [#allocation3]  }
 0x120   :  { %279 = dma.done.wait [#allocation3], 64  }
 0x121   :  { %280 = vsyncadd [#allocation3], 4294967232 }
 0x122   :  { %196 = vsyncpa [#allocation3], 1 }

</bundles_post_ra>
